<compile_context>
chip_gen: v6e
topology: v6e:2x2x1
jax: 0.10.0
libtpu: 0.0.40
codegen_flags: <defaults>
</compile_context>

<pallas_src>
import jax
import jax.numpy as jnp
from jax.experimental import pallas as pl
from jax.experimental.pallas import tpu as pltpu

LANE = 128
SUBLANE = 8


def _round_up(n, m):
    return ((n + m - 1) // m) * m


def actor_part2_kernel(x_ref, w1_ref, b1_ref, g_ref, beta_ref, w2_ref, b2_ref,
                       o_ref):
    """One batch tile per grid step; all params VMEM-resident.

    x_ref   : (TB, Din)  f32
    w1_ref  : (Din, H)   f32 or bf16 (pre-cast once in prepare_params)
    b1_ref  : (1, H)     f32
    g_ref   : (1, H)     f32   LayerNorm weight (gamma)
    beta_ref: (1, H)     f32   LayerNorm bias (beta)
    w2_ref  : (H, A)     f32 or bf16
    b2_ref  : (1, A)     f32
    o_ref   : (TB, A)    f32   unpadded output tile
    """
    mm_dtype = w1_ref.dtype

    # linear1: x @ W1 + b1  (MXU, f32 accumulate). Cast only the small
    # activation tile per step; weights are already in mm_dtype.
    x = x_ref[...].astype(mm_dtype)
    h = jnp.dot(x, w1_ref[...], preferred_element_type=jnp.float32) + b1_ref[...]

    # LayerNorm over hidden dim: two-pass (biased variance), eps=1e-5 to match
    # PyTorch exactly. Kept in f32 (v5e VPU/EUP have no bf16).
    mean = jnp.mean(h, axis=-1, keepdims=True)
    centered = h - mean
    var = jnp.mean(centered * centered, axis=-1, keepdims=True)
    h = centered * jax.lax.rsqrt(var + 1e-5) * g_ref[...] + beta_ref[...]

    # ReLU
    h = jnp.maximum(h, 0.0)

    # linear2: h @ W2 + b2, then tanh. Output tile is unpadded (TB, A): total
    # output HBM traffic is B*A*4 bytes and no wrapper slice pass is needed.
    out = jnp.dot(h.astype(mm_dtype), w2_ref[...],
                  preferred_element_type=jnp.float32) + b2_ref[...]
    o_ref[...] = jnp.tanh(out)


def prepare_params(w1, b1, gamma, beta, w2, b2, matmul_dtype=jnp.float32):
    """One-time parameter preparation (hoisted out of the per-call hot path).

    Matmul operands (W1, W2) are cast to `matmul_dtype` once; biases and
    LayerNorm params stay f32 (all elementwise math is f32 in the kernel).
    """
    return (w1.astype(matmul_dtype),
            b1.astype(jnp.float32).reshape(1, -1),
            gamma.astype(jnp.float32).reshape(1, -1),
            beta.astype(jnp.float32).reshape(1, -1),
            w2.astype(matmul_dtype),
            b2.astype(jnp.float32).reshape(1, -1))


def _choose_tb(B, block_rows, target_steps):
    """Batch tile rows: aim for `target_steps` grid steps (>=2 feeds both v7x
    TensorCores), capped at `block_rows`, multiple of 8 sublanes."""
    tb = -(-B // max(int(target_steps), 1))          # ceil(B / target_steps)
    tb = _round_up(max(tb, SUBLANE), SUBLANE)
    return min(tb, _round_up(block_rows, SUBLANE))


def actor_part2(x, params, *, block_rows=512, target_steps=2):
    """Fused ActorPart2 forward.

    x      : (B, num_inputs) f32
    params : tuple from prepare_params()
    Tuning : on single-TC chips (v5e/v6e) with large B, set target_steps=1 and
             raise block_rows (512-1024); on v7x keep target_steps=2 so both
             TensorCores get work. VMEM is never a constraint at these shapes.
    """
    w1, b1, gamma, beta, w2, b2 = params
    B, DIN = x.shape
    H, A = w2.shape

    tb = _choose_tb(B, block_rows, target_steps)
    grid = (pl.cdiv(B, tb),)   # partial last block handled by Pallas (no x pad)

    # Advisory cost hint so XLA schedules surrounding ops around this tiny call.
    param_bytes = sum(int(p.size) * p.dtype.itemsize for p in params)
    cost = pl.CostEstimate(
        flops=2 * B * (DIN * H + H * A) + 10 * B * H,
        transcendentals=B * (A + 1),                     # tanh + rsqrt
        bytes_accessed=int(x.size) * x.dtype.itemsize + B * A * 4 + param_bytes,
    )

    out = pl.pallas_call(
        actor_part2_kernel,
        out_shape=jax.ShapeDtypeStruct((B, A), jnp.float32),
        grid=grid,
        in_specs=[
            pl.BlockSpec((tb, DIN), lambda i: (i, 0)),   # x: tiled over batch
            pl.BlockSpec((DIN, H), lambda i: (0, 0)),    # W1: VMEM-resident
            pl.BlockSpec((1, H), lambda i: (0, 0)),      # b1
            pl.BlockSpec((1, H), lambda i: (0, 0)),      # gamma
            pl.BlockSpec((1, H), lambda i: (0, 0)),      # beta
            pl.BlockSpec((H, A), lambda i: (0, 0)),      # W2 (natural shape)
            pl.BlockSpec((1, A), lambda i: (0, 0)),      # b2
        ],
        out_specs=pl.BlockSpec((tb, A), lambda i: (i, 0)),
        compiler_params=pltpu.CompilerParams(
            dimension_semantics=("parallel",)),          # shards over TCs on v7x
        cost_estimate=cost,
    )(x, w1, b1, gamma, beta, w2, b2)

    return out


def reference(x, w1, b1, gamma, beta, w2, b2):
    h = x @ w1 + b1
    mean = jnp.mean(h, axis=-1, keepdims=True)
    var = jnp.mean((h - mean) ** 2, axis=-1, keepdims=True)
    h = (h - mean) * jax.lax.rsqrt(var + 1e-5) * gamma + beta
    h = jnp.maximum(h, 0.0)
    return jnp.tanh(h @ w2 + b2)


if __name__ == "__main__":
    # Shapes consistent with the module:
    #   batch_size=8, nagents=32 -> rows = 256; num_inputs = 32;
    #   hidden_size = 128; action_space.n = 8
    # (256 rows -> tb=128, grid=(2,) so both v7x TensorCores are exercised.)
    B, DIN, H, A = 256, 32, 128, 8

    key = jax.random.PRNGKey(0)
    kx, kw1, kb1, kw2, kb2 = jax.random.split(key, 5)

    x = jax.random.normal(kx, (B, DIN), dtype=jnp.float32)

    # Deterministic params (mimics nn.Linear uniform(-1/sqrt(fan_in), 1/sqrt(fan_in)))
    lim1 = 1.0 / jnp.sqrt(jnp.float32(DIN))
    w1 = jax.random.uniform(kw1, (DIN, H), jnp.float32, -lim1, lim1)
    b1 = jax.random.uniform(kb1, (1, H), jnp.float32, -lim1, lim1)
    # LayerNorm defaults: weight=1, bias=0
    gamma = jnp.ones((1, H), jnp.float32)
    beta = jnp.zeros((1, H), jnp.float32)
    lim2 = 1.0 / jnp.sqrt(jnp.float32(H))
    w2 = jax.random.uniform(kw2, (H, A), jnp.float32, -lim2, lim2)
    b2 = jax.random.uniform(kb2, (1, A), jnp.float32, -lim2, lim2)

    ref = reference(x, w1, b1, gamma, beta, w2, b2)

    # f32 matmul path: exact PyTorch semantics.
    params_f32 = prepare_params(w1, b1, gamma, beta, w2, b2, jnp.float32)
    out_f32 = jax.block_until_ready(actor_part2(x, params_f32))
    assert out_f32.shape == (B, A)
    assert jnp.allclose(out_f32, ref, atol=1e-5, rtol=1e-5), "f32 mismatch vs reference"

    # bf16 matmul operands (pre-cast once), f32 accumulate/elementwise.
    params_bf16 = prepare_params(w1, b1, gamma, beta, w2, b2, jnp.bfloat16)
    out_bf16 = jax.block_until_ready(actor_part2(x, params_bf16))
    assert out_bf16.shape == (B, A)
    assert jnp.allclose(out_bf16, ref, atol=3e-2, rtol=3e-2), "bf16 mismatch vs reference"

    print("KERNEL_OK")
</pallas_src>

<mosaic_0001>
module attributes {stable_mosaic.version = 11 : i64} {
  func.func @actor_part2_kernel(%arg0: i32, %arg1: memref<128x32xf32, #tpu.memory_space<vmem>>, %arg2: memref<32x128xf32, #tpu.memory_space<vmem>>, %arg3: memref<1x128xf32, #tpu.memory_space<vmem>>, %arg4: memref<1x128xf32, #tpu.memory_space<vmem>>, %arg5: memref<1x128xf32, #tpu.memory_space<vmem>>, %arg6: memref<128x8xf32, #tpu.memory_space<vmem>>, %arg7: memref<1x8xf32, #tpu.memory_space<vmem>>, %arg8: memref<128x8xf32, #tpu.memory_space<vmem>>) attributes {dimension_semantics = [#tpu.dimension_semantics<parallel>], iteration_bounds = array<i64: 2>, scalar_prefetch = 0 : i64, scratch_operands = 0 : i64, tpu.core_type = #tpu.core_type<tc>, window_params = [{transform_indices = @transform_0, window_bounds = array<i64: 128, 32>}, {pipeline_mode = #tpu.pipeline_mode<synchronous>, transform_indices = @transform_1, window_bounds = array<i64: 32, 128>}, {pipeline_mode = #tpu.pipeline_mode<synchronous>, transform_indices = @transform_2, window_bounds = array<i64: 1, 128>}, {pipeline_mode = #tpu.pipeline_mode<synchronous>, transform_indices = @transform_3, window_bounds = array<i64: 1, 128>}, {pipeline_mode = #tpu.pipeline_mode<synchronous>, transform_indices = @transform_4, window_bounds = array<i64: 1, 128>}, {pipeline_mode = #tpu.pipeline_mode<synchronous>, transform_indices = @transform_5, window_bounds = array<i64: 128, 8>}, {pipeline_mode = #tpu.pipeline_mode<synchronous>, transform_indices = @transform_6, window_bounds = array<i64: 1, 8>}, {transform_indices = @transform_7, window_bounds = array<i64: 128, 8>}]} {
    %c0 = arith.constant 0 : index
    %c0_0 = arith.constant 0 : index
    %0 = vector.load %arg1[%c0, %c0_0] : memref<128x32xf32, #tpu.memory_space<vmem>>, vector<128x32xf32>
    %c0_1 = arith.constant 0 : index
    %c0_2 = arith.constant 0 : index
    %1 = vector.load %arg2[%c0_1, %c0_2] : memref<32x128xf32, #tpu.memory_space<vmem>>, vector<32x128xf32>
    %cst = arith.constant dense<0.000000e+00> : vector<128x128xf32>
    %2 = tpu.matmul %0, %1, %cst {dimension_numbers = #tpu.dot_dimension_numbers<[1], [0], [0], [1], [0, 0, 1, 1], [], []>} : vector<128x32xf32>, vector<32x128xf32>, vector<128x128xf32> -> vector<128x128xf32>
    %c0_3 = arith.constant 0 : index
    %c0_4 = arith.constant 0 : index
    %3 = vector.load %arg3[%c0_3, %c0_4] : memref<1x128xf32, #tpu.memory_space<vmem>>, vector<1x128xf32>
    %4 = vector.broadcast %3 : vector<1x128xf32> to vector<128x128xf32>
    %5 = arith.addf %2, %4 : vector<128x128xf32>
    %cst_5 = arith.constant dense<0.000000e+00> : vector<128xf32>
    %6 = vector.multi_reduction <add>, %5, %cst_5 [1] : vector<128x128xf32> to vector<128xf32>
    %7 = vector.shape_cast %6 : vector<128xf32> to vector<128x1xf32>
    %cst_6 = arith.constant 1.280000e+02 : f32
    %8 = vector.broadcast %cst_6 : f32 to vector<128x1xf32>
    %9 = arith.divf %7, %8 : vector<128x1xf32>
    %10 = vector.broadcast %9 : vector<128x1xf32> to vector<128x128xf32>
    %11 = arith.subf %5, %10 : vector<128x128xf32>
    %12 = arith.mulf %11, %11 : vector<128x128xf32>
    %cst_7 = arith.constant dense<0.000000e+00> : vector<128xf32>
    %13 = vector.multi_reduction <add>, %12, %cst_7 [1] : vector<128x128xf32> to vector<128xf32>
    %14 = vector.shape_cast %13 : vector<128xf32> to vector<128x1xf32>
    %cst_8 = arith.constant 1.280000e+02 : f32
    %15 = vector.broadcast %cst_8 : f32 to vector<128x1xf32>
    %16 = arith.divf %14, %15 : vector<128x1xf32>
    %cst_9 = arith.constant 9.99999974E-6 : f32
    %17 = vector.broadcast %cst_9 : f32 to vector<128x1xf32>
    %18 = arith.addf %16, %17 : vector<128x1xf32>
    %19 = math.rsqrt %18 : vector<128x1xf32>
    %20 = vector.broadcast %19 : vector<128x1xf32> to vector<128x128xf32>
    %21 = arith.mulf %11, %20 : vector<128x128xf32>
    %c0_10 = arith.constant 0 : index
    %c0_11 = arith.constant 0 : index
    %22 = vector.load %arg4[%c0_10, %c0_11] : memref<1x128xf32, #tpu.memory_space<vmem>>, vector<1x128xf32>
    %23 = vector.broadcast %22 : vector<1x128xf32> to vector<128x128xf32>
    %24 = arith.mulf %21, %23 : vector<128x128xf32>
    %c0_12 = arith.constant 0 : index
    %c0_13 = arith.constant 0 : index
    %25 = vector.load %arg5[%c0_12, %c0_13] : memref<1x128xf32, #tpu.memory_space<vmem>>, vector<1x128xf32>
    %26 = vector.broadcast %25 : vector<1x128xf32> to vector<128x128xf32>
    %27 = arith.addf %24, %26 : vector<128x128xf32>
    %cst_14 = arith.constant 0.000000e+00 : f32
    %28 = vector.broadcast %cst_14 : f32 to vector<128x128xf32>
    %29 = arith.maximumf %27, %28 : vector<128x128xf32>
    %c0_15 = arith.constant 0 : index
    %c0_16 = arith.constant 0 : index
    %30 = vector.load %arg6[%c0_15, %c0_16] : memref<128x8xf32, #tpu.memory_space<vmem>>, vector<128x8xf32>
    %cst_17 = arith.constant dense<0.000000e+00> : vector<128x8xf32>
    %31 = tpu.matmul %29, %30, %cst_17 {dimension_numbers = #tpu.dot_dimension_numbers<[1], [0], [0], [1], [0, 0, 1, 1], [], []>} : vector<128x128xf32>, vector<128x8xf32>, vector<128x8xf32> -> vector<128x8xf32>
    %c0_18 = arith.constant 0 : index
    %c0_19 = arith.constant 0 : index
    %32 = vector.load %arg7[%c0_18, %c0_19] : memref<1x8xf32, #tpu.memory_space<vmem>>, vector<1x8xf32>
    %33 = vector.broadcast %32 : vector<1x8xf32> to vector<128x8xf32>
    %34 = arith.addf %31, %33 : vector<128x8xf32>
    %35 = math.tanh %34 : vector<128x8xf32>
    %c0_20 = arith.constant 0 : index
    %c0_21 = arith.constant 0 : index
    %36 = vector.load %arg8[%c0_20, %c0_21] : memref<128x8xf32, #tpu.memory_space<vmem>>, vector<128x8xf32>
    tpu.vector_store %arg8[%c0_20, %c0_21], %35 {strides = array<i32>} : memref<128x8xf32, #tpu.memory_space<vmem>>, vector<128x8xf32>,
    return
  }
  func.func @transform_0(%arg0: i32) -> (i32, i32) {
    %c0_i32 = arith.constant 0 : i32
    %c0_i32_0 = arith.constant 0 : i32
    return %arg0, %c0_i32 : i32, i32
  }
  func.func @transform_1(%arg0: i32) -> (i32, i32) {
    %c0_i32 = arith.constant 0 : i32
    %c0_i32_0 = arith.constant 0 : i32
    %c0_i32_1 = arith.constant 0 : i32
    return %c0_i32, %c0_i32_0 : i32, i32
  }
  func.func @transform_2(%arg0: i32) -> (i32, i32) {
    %c0_i32 = arith.constant 0 : i32
    %c0_i32_0 = arith.constant 0 : i32
    %c0_i32_1 = arith.constant 0 : i32
    return %c0_i32, %c0_i32_0 : i32, i32
  }
  func.func @transform_3(%arg0: i32) -> (i32, i32) {
    %c0_i32 = arith.constant 0 : i32
    %c0_i32_0 = arith.constant 0 : i32
    %c0_i32_1 = arith.constant 0 : i32
    return %c0_i32, %c0_i32_0 : i32, i32
  }
  func.func @transform_4(%arg0: i32) -> (i32, i32) {
    %c0_i32 = arith.constant 0 : i32
    %c0_i32_0 = arith.constant 0 : i32
    %c0_i32_1 = arith.constant 0 : i32
    return %c0_i32, %c0_i32_0 : i32, i32
  }
  func.func @transform_5(%arg0: i32) -> (i32, i32) {
    %c0_i32 = arith.constant 0 : i32
    %c0_i32_0 = arith.constant 0 : i32
    %c0_i32_1 = arith.constant 0 : i32
    return %c0_i32, %c0_i32_0 : i32, i32
  }
  func.func @transform_6(%arg0: i32) -> (i32, i32) {
    %c0_i32 = arith.constant 0 : i32
    %c0_i32_0 = arith.constant 0 : i32
    %c0_i32_1 = arith.constant 0 : i32
    return %c0_i32, %c0_i32_0 : i32, i32
  }
  func.func @transform_7(%arg0: i32) -> (i32, i32) {
    %c0_i32 = arith.constant 0 : i32
    %c0_i32_0 = arith.constant 0 : i32
    return %arg0, %c0_i32 : i32, i32
  }
}

</mosaic_0001>

<bundles_post_ra>
// kernel: tpu_custom_call.1
= control target key start
LH: loop header
LB: loop body
LE: loop exit
PB: predicated region body
PF: predicated region fallthrough
CT: control target
= control target key end

     0   :  { %s1322_s24 = smov 0   ;;  %s1638_s0 = inlined_call_operand.vmem [shape: f32[256,32], index: 0, kind: input, shape index: {}]   ;;  %s1639_s1 = inlined_call_operand.vmem [shape: f32[32,128], index: 1, kind: input, shape index: {}]   ;;  %s1640_s2 = inlined_call_operand.vmem [shape: f32[1,128], index: 2, kind: input, shape index: {}]   ;;  %s1641_s3 = inlined_call_operand.vmem [shape: f32[1,128], index: 3, kind: input, shape index: {}]   ;;  %s1642_s4 = inlined_call_operand.vmem [shape: f32[1,128], index: 4, kind: input, shape index: {}]   ;;  %s1643_s5 = inlined_call_operand.vmem [shape: f32[128,8], index: 5, kind: input, shape index: {}]   ;;  %s1644_s6 = inlined_call_operand.vmem [shape: f32[1,8], index: 6, kind: input, shape index: {}]   ;;  %s1645_s7 = inlined_call_operand.vmem [shape: f32[256,8], index: 7, kind: output, shape index: {}]  }
   0x1 LB: > { %s999_s25 = sadd.s32 4294967295, %s1280_s24   ;;  %p1003_p0 = scmp.ge.s32.totalorder %s1280_s24, 1  ;;  %s1280_s24 = sphi %s1322_s24, %s17_s24  }
   0x2   : > { %p238_p1 = scmp.lt.s32.totalorder %s1280_s24, 3 }
   0x4   : > { %p239_p2 = pnand %p1003_p0, %p238_p1 }
   0x5   : > { %s1004_s30 = sshll.u32 (!%p239_p2), %s999_s25, 4 }
   0x6   : > { %242 = sbr.rel (%p239_p2) target bundleno = 784 (0x310), region = 48  ;;  %p271_p3 = scmp.lt.s32.totalorder (!%p239_p2), %s1004_s30, 31 }
   0xb   : > { %v301_v0 = vld [vmem:[%s1639_s1 + $0x18] sm:$0xff]  ;;  %v300_v1 = vld [vmem:[%s1639_s1 + $0x10] sm:$0xff]  ;;  %v299_v2 = vld [vmem:[%s1639_s1 + $0x8] sm:$0xff]  ;;  %s1647_s30 = smov (!%p271_p3, %s1004_s30), 31  ;;  %vm309_vm0 = vcmask 261120   ;;  %vm926_vm1 = vcmask 64512  }
   0xc   : > { %1082 = vmatprep.subr.mxu0 %v301_v0  ;;  %v298_v3 = vld [vmem:[%s1639_s1] sm:$0xff]  ;;  %s1005_s12 = sshll.u32 %s1647_s30, 3 }
   0xd   : > { %1083 = vmatpush3.msra.mxu0 %v301_v0  ;;  %s1350_s15 = scalar_lea.vmem %s1638_s0, %s1005_s12  ;;  %v1008_v21 = vld [vmem:[%s1640_s2] ss:$0 sm:$0xff]  ;;  %s1601_s18 = scalar_lea.vmem %s1645_s7, %s1005_s12 }
   0xe   : > { %1084 = vmatprep.subr.mxu0 %v300_v1  ;;  %v282_v4 = vld [vmem:[%s1350_s15] sm:$0xff]  ;;  %v283_v5 = vld [vmem:[%s1350_s15 + $0x8] sm:$0xff]  ;;  %v284_v6 = vld [vmem:[%s1350_s15 + $0x10] sm:$0xff] }
   0xf   : > { %1085 = vmatpush3.msra.mxu0 %v300_v1  ;;  %1090 = vmatprep.mubr.msk.f32.mxu0 %vm309_vm0, %v282_v4  ;;  %v285_v7 = vld [vmem:[%s1350_s15 + $0x18] sm:$0xff]  ;;  %v286_v8 = vld [vmem:[%s1350_s15 + $0x20] sm:$0xff]  ;;  %v287_v9 = vld [vmem:[%s1350_s15 + $0x28] sm:$0xff] }
  0x10   : > { %1086 = vmatprep.subr.mxu0 %v299_v2  ;;  %v288_v10 = vld [vmem:[%s1350_s15 + $0x30] sm:$0xff]  ;;  %v289_v11 = vld [vmem:[%s1350_s15 + $0x38] sm:$0xff]  ;;  %v290_v12 = vld [vmem:[%s1350_s15 + $0x40] sm:$0xff] }
  0x11   : > { %1087 = vmatpush3.msra.mxu0 %v299_v2  ;;  %v291_v13 = vld [vmem:[%s1350_s15 + $0x48] sm:$0xff]  ;;  %v292_v14 = vld [vmem:[%s1350_s15 + $0x50] sm:$0xff]  ;;  %v293_v15 = vld [vmem:[%s1350_s15 + $0x58] sm:$0xff] }
  0x12   : > { %1088 = vmatprep.subr.mxu0 %v298_v3  ;;  %v294_v16 = vld [vmem:[%s1350_s15 + $0x60] sm:$0xff]  ;;  %v295_v17 = vld [vmem:[%s1350_s15 + $0x68] sm:$0xff]  ;;  %v296_v18 = vld [vmem:[%s1350_s15 + $0x70] sm:$0xff] }
  0x13   : > { %1089 = vmatpush3.msra.mxu0 %v298_v3  ;;  %v297_v19 = vld [vmem:[%s1350_s15 + $0x78] sm:$0xff] }
  0x14   : > { %1091 = vmatmul.mubr.msk.f32.vlgmr.msra.gmra.mxu0 %vm309_vm0, %v283_v5 }
  0x15   : > { %1093 = vmatprep.mubr.msk.f32.mxu0 %vm309_vm0, %v284_v6 }
  0x18   : > { %1094 = vmatmul.mubr.msk.f32.gmra.mxu0 %vm309_vm0, %v285_v7 }
  0x19   : > { %1096 = vmatprep.mubr.msk.f32.mxu0 %vm309_vm0, %v286_v8 }
  0x1c   : > { %1097 = vmatmul.mubr.msk.f32.gmra.mxu0 %vm309_vm0, %v287_v9 }
  0x1d   : > { %1099 = vmatprep.mubr.msk.f32.mxu0 %vm309_vm0, %v288_v10 }
  0x20   : > { %1100 = vmatmul.mubr.msk.f32.gmra.mxu0 %vm309_vm0, %v289_v11 }
  0x21   : > { %1102 = vmatprep.mubr.msk.f32.mxu0 %vm309_vm0, %v290_v12 }
  0x24   : > { %1103 = vmatmul.mubr.msk.f32.gmra.mxu0 %vm309_vm0, %v291_v13 }
  0x25   : > { %1105 = vmatprep.mubr.msk.f32.mxu0 %vm309_vm0, %v292_v14 }
  0x28   : > { %1106 = vmatmul.mubr.msk.f32.gmra.mxu0 %vm309_vm0, %v293_v15 }
  0x29   : > { %1108 = vmatprep.mubr.msk.f32.mxu0 %vm309_vm0, %v294_v16 }
  0x2c   : > { %1109 = vmatmul.mubr.msk.f32.gmra.mxu0 %vm309_vm0, %v295_v17 }
  0x2d   : > { %1111 = vmatprep.mubr.msk.f32.mxu0 %vm309_vm0, %v296_v18 }
  0x30   : > { %1112 = vmatmul.mubr.msk.f32.gmra.mxu0 %vm309_vm0, %v297_v19 }
  0xd4   : > { %v1092_v20 = vpop.f32.mrf.mxu0 }
  0xd5   : > { %v430_v37 = vadd.f32 %v1092_v20, %v1008_v21 }
  0xd6   : > { %v424_v22 = vpop.f32.mrf.mxu0 }
  0xd7   : > { %v1387_v23 = vadd.f32 %v1008_v21, %v424_v22 }
  0xd8   : > { %v1095_v24 = vpop.f32.mrf.mxu0 }
  0xd9   : > { %503 = vadd.xlane.f32.xlu0 %v1387_v23  ;;  %v1396_v44 = vadd.f32 %v1095_v24, %v1008_v21 }
  0xda   : > { %v434_v25 = vpop.f32.mrf.mxu0 }
  0xdb   : > { %v1393_v40 = vadd.f32 %v1008_v21, %v434_v25 }
  0xdc   : > { %v1098_v26 = vpop.f32.mrf.mxu0 }
  0xdd   : > { %v1404_v50 = vadd.f32 %v1098_v26, %v1008_v21  ;;  %v757_v26 = vld [vmem:[%s1643_s5 + $0x78] sm:$0xff] }
  0xde   : > { %v444_v27 = vpop.f32.mrf.mxu0  ;;  %1114 = vmatprep.subr.mxu0 %v757_v26  ;;  %1170 = vmatprep.subr.mxu1 %v757_v26 }
  0xdf   : > { %v1399_v47 = vadd.f32 %v1008_v21, %v444_v27  ;;  %1115 = vmatpush3.msra.mxu0 %v757_v26  ;;  %1186 = vmatpush3.msra.mxu1 %v757_v26 }
  0xe0   : > { %v1101_v28 = vpop.f32.mrf.mxu0 }
  0xe1   : > { %v460_v29 = vadd.f32 %v1101_v28, %v1008_v21 }
  0xe2   : > { %v454_v30 = vpop.f32.mrf.mxu0 }
  0xe3   : > { %517 = vadd.xlane.f32.xlu0 %v460_v29  ;;  %v455_v32 = vadd.f32 %v1008_v21, %v454_v30 }
  0xe4   : > { %v1104_v31 = vpop.f32.mrf.mxu0 }
  0xe5   : > { %v470_v33 = vadd.f32 %v1104_v31, %v1008_v21 }
  0xe6   : > { %v464_v34 = vpop.f32.mrf.mxu0 }
  0xe7   : > { %521 = vadd.xlane.f32.xlu1 %v470_v33  ;;  %515 = vadd.xlane.f32.xlu0 %v455_v32  ;;  %v1390_v35 = vadd.f32 %v1008_v21, %v464_v34  ;;  %v756_v34 = vld [vmem:[%s1643_s5 + $0x70] sm:$0xff] }
  0xe8   : > { %v1107_v36 = vpop.f32.mrf.mxu0  ;;  %1116 = vmatprep.subr.mxu0 %v756_v34  ;;  %1171 = vmatprep.subr.mxu1 %v756_v34 }
  0xe9   : > { %v480_v38 = vadd.f32 %v1107_v36, %v1008_v21  ;;  %v755_v36 = vld [vmem:[%s1643_s5 + $0x68] sm:$0xff]  ;;  %1117 = vmatpush3.msra.mxu0 %v756_v34  ;;  %1187 = vmatpush3.msra.mxu1 %v756_v34 }
  0xea   : > { %v474_v39 = vpop.f32.mrf.mxu0  ;;  %1118 = vmatprep.subr.mxu0 %v755_v36  ;;  %1172 = vmatprep.subr.mxu1 %v755_v36 }
  0xeb   : > { %519 = vadd.xlane.f32.xlu1 %v1390_v35  ;;  %505 = vadd.xlane.f32.xlu0 %v430_v37  ;;  %v475_v42 = vadd.f32 %v1008_v21, %v474_v39 }
  0xec   : > { %v1110_v41 = vpop.f32.mrf.mxu0  ;;  %1119 = vmatpush3.msra.mxu0 %v755_v36  ;;  %1188 = vmatpush3.msra.mxu1 %v755_v36 }
  0xed   : > { %v490_v45 = vadd.f32 %v1110_v41, %v1008_v21 }
  0xee   : > { %v484_v43 = vpop.f32.mrf.mxu0 }
  0xef   : > { %525 = vadd.xlane.f32.xlu1 %v480_v38  ;;  %507 = vadd.xlane.f32.xlu0 %v1393_v40  ;;  %v1402_v48 = vadd.f32 %v1008_v21, %v484_v43 }
  0xf0   : > { %v1113_v46 = vpop.f32.mrf.mxu0 }
  0xf1   : > { %v1411_v52 = vadd.f32 %v1113_v46, %v1008_v21 }
  0xf2   : > { %v494_v49 = vpop.f32.mrf.mxu0 }
  0xf3   : > { %523 = vadd.xlane.f32.xlu1 %v475_v42  ;;  %509 = vadd.xlane.f32.xlu0 %v1396_v44  ;;  %v1408_v51 = vadd.f32 %v1008_v21, %v494_v49  ;;  %v753_v49 = vld [vmem:[%s1643_s5 + $0x58] sm:$0xff] }
  0xf7   : > { %529 = vadd.xlane.f32.xlu1 %v490_v45  ;;  %511 = vadd.xlane.f32.xlu0 %v1399_v47 }
  0xfb   : > { %527 = vadd.xlane.f32.xlu1 %v1402_v48  ;;  %513 = vadd.xlane.f32.xlu0 %v1404_v50 }
  0xff   : > { %531 = vadd.xlane.f32.xlu1 %v1408_v51 }
 0x103   : > { %533 = vadd.xlane.f32.xlu1 %v1411_v52 }
 0x162   : > { %v504_v53 = vpop.xlane.xlu0 %503 }
 0x163   : > { %v536_v0 = vmul.f32 0.0078125, %v504_v53 }
 0x165   : > { %v1425_v7 = vsub.f32 %v1387_v23, %v536_v0  ;;  %v748_v0 = vld [vmem:[%s1643_s5 + $0x30] sm:$0xff] }
 0x167   : > { %v568_v16 = vmul.f32 %v1425_v7, %v1425_v7 }
 0x16c   : > { %v518_v54 = vpop.xlane.xlu0 %517 }
 0x16d   : > { %v543_v55 = vmul.f32 0.0078125, %v518_v54 }
 0x16f   : > { %v1414_v56 = vsub.f32 %v460_v29, %v543_v55 }
 0x170   : > { %v522_v57 = vpop.xlane.xlu1 %521  ;;  %v516_v58 = vpop.xlane.xlu0 %515 }
 0x171   : > { %v545_v59 = vmul.f32 0.0078125, %v522_v57  ;;  %v575_v60 = vmul.f32 %v1414_v56, %v1414_v56  ;;  %v542_v4 = vmul.f32 0.0078125, %v516_v58  ;;  %v752_v57 = vld [vmem:[%s1643_s5 + $0x50] sm:$0xff] }
 0x173   : > { %v1418_v61 = vsub.f32 %v470_v33, %v545_v59  ;;  %598 = vadd.xlane.f32.xlu1 %v575_v60  ;;  %v1431_v11 = vsub.f32 %v455_v32, %v542_v4  ;;  %v745_v4 = vld [vmem:[%s1643_s5 + $0x18] sm:$0xff] }
 0x174   : > { %v520_v62 = vpop.xlane.xlu1 %519  ;;  %v506_v63 = vpop.xlane.xlu0 %505 }
 0x175   : > { %v537_v1 = vmul.f32 0.0078125, %v506_v63  ;;  %v577_v2 = vmul.f32 %v1418_v61, %v1418_v61  ;;  %v544_v13 = vmul.f32 0.0078125, %v520_v62  ;;  %v574_v20 = vmul.f32 %v1431_v11, %v1431_v11  ;;  %v751_v62 = vld [vmem:[%s1643_s5 + $0x48] sm:$0xff]  ;;  %v749_v63 = vld [vmem:[%s1643_s5 + $0x38] sm:$0xff] }
 0x177   : > { %v1422_v3 = vsub.f32 %v430_v37, %v537_v1  ;;  %602 = vadd.xlane.f32.xlu1 %v577_v2  ;;  %v1442_v21 = vsub.f32 %v1390_v35, %v544_v13  ;;  %v747_v1 = vld [vmem:[%s1643_s5 + $0x28] sm:$0xff]  ;;  %v746_v2 = vld [vmem:[%s1643_s5 + $0x20] sm:$0xff] }
 0x178   : > { %v526_v5 = vpop.xlane.xlu1 %525  ;;  %v508_v6 = vpop.xlane.xlu0 %507 }
 0x179   : > { %v547_v8 = vmul.f32 0.0078125, %v526_v5  ;;  %v569_v9 = vmul.f32 %v1422_v3, %v1422_v3  ;;  %v538_v22 = vmul.f32 0.0078125, %v508_v6  ;;  %v576_v33 = vmul.f32 %v1442_v21, %v1442_v21  ;;  %v744_v5 = vld [vmem:[%s1643_s5 + $0x10] sm:$0xff]  ;;  %v743_v6 = vld [vmem:[%s1643_s5 + $0x8] sm:$0xff] }
 0x17b   : > { %v1429_v10 = vsub.f32 %v480_v38, %v547_v8  ;;  %586 = vadd.xlane.f32.xlu0 %v569_v9  ;;  %v1452_v30 = vsub.f32 %v1393_v40, %v538_v22  ;;  %v742_v8 = vld [vmem:[%s1643_s5] sm:$0xff] }
 0x17c   : > { %v524_v12 = vpop.xlane.xlu1 %523  ;;  %v510_v17 = vpop.xlane.xlu0 %509 }
 0x17d   : > { %v546_v14 = vmul.f32 0.0078125, %v524_v12  ;;  %v579_v15 = vmul.f32 %v1429_v10, %v1429_v10  ;;  %v539_v27 = vmul.f32 0.0078125, %v510_v17 }
 0x17f   : > { %v1437_v18 = vsub.f32 %v475_v42, %v546_v14  ;;  %606 = vadd.xlane.f32.xlu1 %v579_v15  ;;  %584 = vadd.xlane.f32.xlu0 %v568_v16  ;;  %v1468_v37 = vsub.f32 %v1396_v44, %v539_v27  ;;  %v570_v42 = vmul.f32 %v1452_v30, %v1452_v30  ;;  %v754_v44 = vld [vmem:[%s1643_s5 + $0x60] sm:$0xff] }
 0x180   : > { %v530_v19 = vpop.xlane.xlu1 %529  ;;  %v512_v28 = vpop.xlane.xlu0 %511  ;;  %1120 = vmatprep.subr.mxu0 %v754_v44  ;;  %1173 = vmatprep.subr.mxu1 %v754_v44 }
 0x181   : > { %v549_v23 = vmul.f32 0.0078125, %v530_v19  ;;  %v578_v24 = vmul.f32 %v1437_v18, %v1437_v18  ;;  %v540_v39 = vmul.f32 0.0078125, %v512_v28  ;;  %1121 = vmatpush3.msra.mxu0 %v754_v44  ;;  %1189 = vmatpush3.msra.mxu1 %v754_v44 }
 0x182   : > { %1122 = vmatprep.subr.mxu0 %v753_v49  ;;  %1174 = vmatprep.subr.mxu1 %v753_v49 }
 0x183   : > { %v1446_v25 = vsub.f32 %v490_v45, %v549_v23  ;;  %604 = vadd.xlane.f32.xlu1 %v578_v24  ;;  %596 = vadd.xlane.f32.xlu0 %v574_v20  ;;  %v1486_v53 = vsub.f32 %v1399_v47, %v540_v39 }
 0x184   : > { %v528_v29 = vpop.xlane.xlu1 %527  ;;  %v514_v43 = vpop.xlane.xlu0 %513  ;;  %1123 = vmatpush3.msra.mxu0 %v753_v49  ;;  %1190 = vmatpush3.msra.mxu1 %v753_v49 }
 0x185   : > { %v548_v31 = vmul.f32 0.0078125, %v528_v29  ;;  %v581_v32 = vmul.f32 %v1446_v25, %v1446_v25  ;;  %v541_v54 = vmul.f32 0.0078125, %v514_v43  ;;  %v572_v60 = vmul.f32 %v1486_v53, %v1486_v53  ;;  %1124 = vmatprep.subr.mxu0 %v752_v57  ;;  %1175 = vmatprep.subr.mxu1 %v752_v57 }
 0x186   : > { %1125 = vmatpush3.msra.mxu0 %v752_v57  ;;  %1191 = vmatpush3.msra.mxu1 %v752_v57 }
 0x187   : > { %v1462_v35 = vsub.f32 %v1402_v48, %v548_v31  ;;  %610 = vadd.xlane.f32.xlu1 %v581_v32  ;;  %600 = vadd.xlane.f32.xlu0 %v576_v33  ;;  %v571_v48 = vmul.f32 %v1468_v37, %v1468_v37  ;;  %v1497_v47 = vsub.f32 %v1404_v50, %v541_v54  ;;  %v750_v50 = vld [vmem:[%s1643_s5 + $0x40] sm:$0xff] }
 0x188   : > { %v532_v38 = vpop.xlane.xlu1 %531  ;;  %1126 = vmatprep.subr.mxu0 %v751_v62  ;;  %1176 = vmatprep.subr.mxu1 %v751_v62 }
 0x189   : > { %v550_v40 = vmul.f32 0.0078125, %v532_v38  ;;  %v580_v41 = vmul.f32 %v1462_v35, %v1462_v35  ;;  %1127 = vmatpush3.msra.mxu0 %v751_v62  ;;  %1192 = vmatpush3.msra.mxu1 %v751_v62 }
 0x18a   : > { %1128 = vmatprep.subr.mxu0 %v750_v50  ;;  %1177 = vmatprep.subr.mxu1 %v750_v50 }
 0x18b   : > { %v1478_v45 = vsub.f32 %v1408_v51, %v550_v40  ;;  %608 = vadd.xlane.f32.xlu1 %v580_v41  ;;  %588 = vadd.xlane.f32.xlu0 %v570_v42 }
 0x18c   : > { %v534_v46 = vpop.xlane.xlu1 %533  ;;  %1129 = vmatpush3.msra.mxu0 %v750_v50  ;;  %1193 = vmatpush3.msra.mxu1 %v750_v50 }
 0x18d   : > { %v551_v55 = vmul.f32 0.0078125, %v534_v46  ;;  %v582_v51 = vmul.f32 %v1478_v45, %v1478_v45  ;;  %1130 = vmatprep.subr.mxu0 %v749_v63  ;;  %1178 = vmatprep.subr.mxu1 %v749_v63 }
 0x18e   : > { %1131 = vmatpush3.msra.mxu0 %v749_v63  ;;  %1194 = vmatpush3.msra.mxu1 %v749_v63  ;;  %v1539_v63 = vld [vmem:[%s1641_s3] ss:$0 sm:$0xff] }
 0x18f   : > { %v1494_v58 = vsub.f32 %v1411_v52, %v551_v55  ;;  %612 = vadd.xlane.f32.xlu1 %v582_v51  ;;  %590 = vadd.xlane.f32.xlu0 %v571_v48  ;;  %v573_v52 = vmul.f32 %v1497_v47, %v1497_v47 }
 0x190   : > { %1132 = vmatprep.subr.mxu0 %v748_v0  ;;  %1179 = vmatprep.subr.mxu1 %v748_v0 }
 0x191   : > { %v583_v59 = vmul.f32 %v1494_v58, %v1494_v58  ;;  %1133 = vmatpush3.msra.mxu0 %v748_v0  ;;  %1195 = vmatpush3.msra.mxu1 %v748_v0 }
 0x192   : > { %1134 = vmatprep.subr.mxu0 %v747_v1  ;;  %1180 = vmatprep.subr.mxu1 %v747_v1 }
 0x193   : > { %614 = vadd.xlane.f32.xlu1 %v583_v59  ;;  %592 = vadd.xlane.f32.xlu0 %v572_v60 }
 0x194   : > { %1135 = vmatpush3.msra.mxu0 %v747_v1  ;;  %1196 = vmatpush3.msra.mxu1 %v747_v1 }
 0x195   : > { %1136 = vmatprep.subr.mxu0 %v746_v2  ;;  %1181 = vmatprep.subr.mxu1 %v746_v2 }
 0x196   : > { %1137 = vmatpush3.msra.mxu0 %v746_v2  ;;  %1197 = vmatpush3.msra.mxu1 %v746_v2 }
 0x197   : > { %594 = vadd.xlane.f32.xlu0 %v573_v52  ;;  %1138 = vmatprep.subr.mxu0 %v745_v4 }
 0x198   : > { %1139 = vmatpush3.msra.mxu0 %v745_v4  ;;  %1182 = vmatprep.subr.mxu1 %v745_v4 }
 0x199   : > { %1140 = vmatprep.subr.mxu0 %v744_v5  ;;  %1198 = vmatpush3.msra.mxu1 %v745_v4 }
 0x19a   : > { %1141 = vmatpush3.msra.mxu0 %v744_v5  ;;  %1183 = vmatprep.subr.mxu1 %v744_v5 }
 0x19b   : > { %1142 = vmatprep.subr.mxu0 %v743_v6  ;;  %1199 = vmatpush3.msra.mxu1 %v744_v5 }
 0x19c   : > { %1143 = vmatpush3.msra.mxu0 %v743_v6  ;;  %1184 = vmatprep.subr.mxu1 %v743_v6 }
 0x19d   : > { %1144 = vmatprep.subr.mxu0 %v742_v8  ;;  %1200 = vmatpush3.msra.mxu1 %v743_v6 }
 0x19e   : > { %1145 = vmatpush3.msra.mxu0 %v742_v8  ;;  %1185 = vmatprep.subr.mxu1 %v742_v8 }
 0x19f   : > { %1201 = vmatpush3.msra.mxu1 %v742_v8 }
 0x1fc   : > { %v599_v9 = vpop.xlane.xlu1 %598 }
 0x1fd   : > { %v623_v12 = vmul.f32 0.0078125, %v599_v9 }
 0x1ff   : > { %v639_v16 = vadd.f32 1e-05, %v623_v12 }
 0x200   : > { %v603_v13 = vpop.xlane.xlu1 %602 }
 0x201   : > { %v625_v17 = vmul.f32 0.0078125, %v603_v13 }
 0x203   : > { %v641_v24 = vadd.f32 1e-05, %v625_v17 }
 0x204   : > { %v587_v14 = vpop.xlane.xlu0 %586 }
 0x205   : > { %v617_v15 = vmul.f32 0.0078125, %v587_v14 }
 0x207   : > { %v633_v19 = vadd.f32 1e-05, %v617_v15 }
 0x208   : > { %v607_v20 = vpop.xlane.xlu1 %606  ;;  %v585_v22 = vpop.xlane.xlu0 %584 }
 0x209   : > { %1210 = vrsqrt.f32 %v633_v19  ;;  %v616_v23 = vmul.f32 0.0078125, %v585_v22  ;;  %v627_v26 = vmul.f32 0.0078125, %v607_v20 }
 0x20a   : > { %1212 = vrsqrt.f32 %v639_v16 }
 0x20b   : > { %v632_v27 = vadd.f32 1e-05, %v616_v23  ;;  %v643_v33 = vadd.f32 1e-05, %v627_v26 }
 0x20c   : > { %v605_v28 = vpop.xlane.xlu1 %604  ;;  %v597_v29 = vpop.xlane.xlu0 %596 }
 0x20d   : > { %v626_v31 = vmul.f32 0.0078125, %v605_v28  ;;  %v622_v32 = vmul.f32 0.0078125, %v597_v29  ;;  %1214 = vrsqrt.f32 %v632_v27 }
 0x20e   : > { %1216 = vrsqrt.f32 %v641_v24 }
 0x20f   : > { %v642_v34 = vadd.f32 1e-05, %v626_v31  ;;  %v638_v36 = vadd.f32 1e-05, %v622_v32 }
 0x210   : > { %v611_v38 = vpop.xlane.xlu1 %610  ;;  %v601_v39 = vpop.xlane.xlu0 %600 }
 0x211   : > { %1218 = vrsqrt.f32 %v642_v34  ;;  %v629_v40 = vmul.f32 0.0078125, %v611_v38  ;;  %v624_v41 = vmul.f32 0.0078125, %v601_v39 }
 0x212   : > { %1220 = vrsqrt.f32 %v638_v36 }
 0x213   : > { %1222 = vrsqrt.f32 %v643_v33  ;;  %v645_v42 = vadd.f32 1e-05, %v629_v40  ;;  %v640_v43 = vadd.f32 1e-05, %v624_v41 }
 0x214   : > { %v609_v44 = vpop.xlane.xlu1 %608  ;;  %v589_v46 = vpop.xlane.xlu0 %588 }
 0x215   : > { %v628_v48 = vmul.f32 0.0078125, %v609_v44  ;;  %v618_v49 = vmul.f32 0.0078125, %v589_v46  ;;  %1224 = vrsqrt.f32 %v640_v43 }
 0x216   : > { %v1211_v54 = vpop.eup %1210  ;;  %1226 = vrsqrt.f32 %v645_v42 }
 0x217   : > { %v1213_v55 = vpop.eup %1212  ;;  %v665_v51 = vmul.f32 %v1211_v54, %v1422_v3  ;;  %v644_v57 = vadd.f32 1e-05, %v628_v48  ;;  %v634_v59 = vadd.f32 1e-05, %v618_v49 }
 0x218   : > { %v613_v60 = vpop.xlane.xlu1 %612  ;;  %v591_v62 = vpop.xlane.xlu0 %590  ;;  %v671_v0 = vmul.f32 %v1213_v55, %v1414_v56  ;;  %v1548_v56 = vld [vmem:[%s1642_s4] ss:$0 sm:$0xff] }
 0x219   : > { %1228 = vrsqrt.f32 %v644_v57  ;;  %v630_v50 = vmul.f32 0.0078125, %v613_v60  ;;  %v619_v52 = vmul.f32 0.0078125, %v591_v62  ;;  %v688_v3 = vmul.f32 %v1539_v63, %v665_v51 }
 0x21a   : > { %1230 = vrsqrt.f32 %v634_v59  ;;  %v1215_v1 = vpop.eup %1214  ;;  %v694_v16 = vmul.f32 %v1539_v63, %v671_v0 }
 0x21b   : > { %v646_v2 = vadd.f32 1e-05, %v630_v50  ;;  %v635_v4 = vadd.f32 1e-05, %v619_v52  ;;  %v1217_v5 = vpop.eup %1216  ;;  %v664_v9 = vmul.f32 %v1215_v1, %v1425_v7  ;;  %v711_v22 = vadd.f32 %v1548_v56, %v688_v3 }
 0x21c   : > { %v615_v6 = vpop.xlane.xlu1 %614  ;;  %v593_v8 = vpop.xlane.xlu0 %592  ;;  %v673_v7 = vmul.f32 %v1217_v5, %v1418_v61  ;;  %v717_v33 = vadd.f32 %v1548_v56, %v694_v16 }
 0x21d   : > { %1232 = vrsqrt.f32 %v646_v2  ;;  %v631_v12 = vmul.f32 0.0078125, %v615_v6  ;;  %v620_v13 = vmul.f32 0.0078125, %v593_v8  ;;  %v687_v15 = vmul.f32 %v1539_v63, %v664_v9 }
 0x21e   : > { %v1219_v14 = vpop.eup %1218  ;;  %1234 = vrsqrt.f32 %v635_v4  ;;  %v727_v38 = vmax.f32 %v711_v22, 0.0  ;;  %v696_v61 = vmul.f32 %v1539_v63, %v673_v7  ;;  %v733_v44 = vmax.f32 %v717_v33, 0.0 }
 0x21f   : > { %v1221_v17 = vpop.eup %1220  ;;  %v647_v19 = vadd.f32 1e-05, %v631_v12  ;;  %v636_v20 = vadd.f32 1e-05, %v620_v13  ;;  %v710_v26 = vadd.f32 %v1548_v56, %v687_v15  ;;  %v674_v28 = vmul.f32 %v1219_v14, %v1437_v18 }
 0x220   : > { %v1223_v23 = vpop.eup %1222  ;;  %v595_v24 = vpop.xlane.xlu0 %594  ;;  %v670_v27 = vmul.f32 %v1221_v17, %v1431_v11  ;;  %v719_v49 = vadd.f32 %v1548_v56, %v696_v61 }
 0x221   : > { %1236 = vrsqrt.f32 %v647_v19  ;;  %v621_v29 = vmul.f32 0.0078125, %v595_v24  ;;  %v726_v31 = vmax.f32 %v710_v26, 0.0  ;;  %v675_v39 = vmul.f32 %v1223_v23, %v1429_v10 }
 0x222   : > { %1238 = vrsqrt.f32 %v636_v20  ;;  %v693_v32 = vmul.f32 %v1539_v63, %v670_v27  ;;  %v1225_v34 = vpop.eup %1224  ;;  %v697_v41 = vmul.f32 %v1539_v63, %v674_v28  ;;  %v735_v0 = vmax.f32 %v719_v49, 0.0 }
 0x223   : > { %v637_v36 = vadd.f32 1e-05, %v621_v29  ;;  %v1227_v40 = vpop.eup %1226  ;;  %1146 = vmatprep.mubr.f32.mxu0 %v726_v31  ;;  %v672_v18 = vmul.f32 %v1225_v34, %v1442_v21  ;;  %v698_v10 = vmul.f32 %v1539_v63, %v675_v39 }
 0x224   : > { %v716_v11 = vadd.f32 %v1548_v56, %v693_v32  ;;  %1147 = vmatmul.mubr.f32.vlgmr.msra.gmra.mxu0 %v727_v38  ;;  %v677_v55 = vmul.f32 %v1227_v40, %v1446_v25  ;;  %v720_v51 = vadd.f32 %v1548_v56, %v697_v41 }
 0x225   : > { %1240 = vrsqrt.f32 %v637_v36  ;;  %v695_v46 = vmul.f32 %v1539_v63, %v672_v18 }
 0x226   : > { %v1229_v42 = vpop.eup %1228  ;;  %v732_v43 = vmax.f32 %v716_v11, 0.0  ;;  %v700_v25 = vmul.f32 %v1539_v63, %v677_v55  ;;  %v736_v2 = vmax.f32 %v720_v51, 0.0 }
 0x227   : > { %v1231_v48 = vpop.eup %1230  ;;  %v676_v54 = vmul.f32 %v1229_v42, %v1462_v35  ;;  %v718_v21 = vadd.f32 %v1548_v56, %v695_v46  ;;  %v721_v35 = vadd.f32 %v1548_v56, %v698_v10 }
 0x228   : > { %1155 = vmatprep.mubr.f32.mxu1 %v732_v43  ;;  %v666_v57 = vmul.f32 %v1231_v48, %v1452_v30 }
 0x229   : > { %1156 = vmatmul.mubr.f32.vlgmr.msra.gmra.mxu1 %v733_v44  ;;  %v699_v59 = vmul.f32 %v1539_v63, %v676_v54  ;;  %v734_v62 = vmax.f32 %v718_v21, 0.0  ;;  %v737_v13 = vmax.f32 %v721_v35, 0.0 }
 0x22a   : > { %v1233_v60 = vpop.eup %1232  ;;  %v689_v50 = vmul.f32 %v1539_v63, %v666_v57 }
 0x22b   : > { %v1235_v52 = vpop.eup %1234  ;;  %v678_v1 = vmul.f32 %v1233_v60, %v1478_v45  ;;  %1158 = vmatprep.mubr.f32.mxu1 %v734_v62  ;;  %v722_v30 = vadd.f32 %v1548_v56, %v699_v59  ;;  %v723_v45 = vadd.f32 %v1548_v56, %v700_v25 }
 0x22c   : > { %v712_v4 = vadd.f32 %v1548_v56, %v689_v50  ;;  %v667_v3 = vmul.f32 %v1235_v52, %v1468_v37 }
 0x22d   : > { %1159 = vmatmul.mubr.f32.gmra.mxu1 %v735_v0  ;;  %v701_v5 = vmul.f32 %v1539_v63, %v678_v1  ;;  %v738_v15 = vmax.f32 %v722_v30, 0.0  ;;  %v739_v23 = vmax.f32 %v723_v45, 0.0 }
 0x22e   : > { %v1237_v6 = vpop.eup %1236  ;;  %1161 = vmatprep.mubr.f32.mxu1 %v736_v2  ;;  %v728_v8 = vmax.f32 %v712_v4, 0.0  ;;  %v690_v9 = vmul.f32 %v1539_v63, %v667_v3 }
 0x22f   : > { %v1239_v12 = vpop.eup %1238  ;;  %v679_v14 = vmul.f32 %v1237_v6, %v1494_v58  ;;  %v724_v37 = vadd.f32 %v1548_v56, %v701_v5 }
 0x230   : > { %1149 = vmatprep.mubr.f32.mxu0 %v728_v8  ;;  %v713_v16 = vadd.f32 %v1548_v56, %v690_v9  ;;  %v668_v17 = vmul.f32 %v1239_v12, %v1486_v53 }
 0x231   : > { %1162 = vmatmul.mubr.f32.gmra.mxu1 %v737_v13  ;;  %v702_v19 = vmul.f32 %v1539_v63, %v679_v14  ;;  %v740_v26 = vmax.f32 %v724_v37, 0.0 }
 0x232   : > { %v1241_v20 = vpop.eup %1240  ;;  %1164 = vmatprep.mubr.f32.mxu1 %v738_v15  ;;  %v729_v22 = vmax.f32 %v713_v16, 0.0  ;;  %v691_v7 = vmul.f32 %v1539_v63, %v668_v17 }
 0x233   : > { %v725_v24 = vadd.f32 %v1548_v56, %v702_v19  ;;  %v669_v58 = vmul.f32 %v1241_v20, %v1497_v47  ;;  %v1027_v47 = vld [vmem:[%s1644_s6] ss:$0 sm:$0xff] }
 0x234   : > { %1150 = vmatmul.mubr.f32.gmra.mxu0 %v729_v22  ;;  %v714_v27 = vadd.f32 %v1548_v56, %v691_v7 }
 0x235   : > { %1165 = vmatmul.mubr.f32.gmra.mxu1 %v739_v23  ;;  %v741_v28 = vmax.f32 %v725_v24, 0.0  ;;  %v692_v53 = vmul.f32 %v1539_v63, %v669_v58 }
 0x236   : > { %1167 = vmatprep.mubr.f32.mxu1 %v740_v26  ;;  %v730_v29 = vmax.f32 %v714_v27, 0.0 }
 0x237   : > { %v715_v31 = vadd.f32 %v1548_v56, %v692_v53 }
 0x238   : > { %1152 = vmatprep.mubr.f32.mxu0 %v730_v29 }
 0x239   : > { %1168 = vmatmul.mubr.f32.gmra.mxu1 %v741_v28  ;;  %v731_v32 = vmax.f32 %v715_v31, 0.0 }
 0x23b   : > { %1153 = vmatmul.mubr.f32.gmra.mxu0 %v731_v32 }
 0x2e4   : > { %v1148_v33 = vpop.f32.mrf.mxu0 }
 0x2e5   : > { %v837_v34 = vadd.f32 %v1148_v33, %v1027_v47 }
 0x2e6   : > { %v831_v36 = vpop.f32.mrf.mxu0 }
 0x2e7   : > { %1242 = vtanh.f32 %v837_v34  ;;  %v832_v38 = vadd.f32 %v1027_v47, %v831_v36 }
 0x2e9   : > { %v1157_v61 = vpop.f32.mrf.mxu1  ;;  %1244 = vtanh.f32 %v832_v38 }
 0x2ea   : > { %v867_v63 = vadd.f32 %v1157_v61, %v1027_v47 }
 0x2eb   : > { %v861_v39 = vpop.f32.mrf.mxu1 }
 0x2ec   : > { %1246 = vtanh.f32 %v867_v63  ;;  %v862_v56 = vadd.f32 %v1027_v47, %v861_v39 }
 0x2ed   : > { %v1160_v40 = vpop.f32.mrf.mxu1 }
 0x2ee   : > { %1248 = vtanh.f32 %v862_v56  ;;  %v877_v11 = vadd.f32 %v1160_v40, %v1027_v47 }
 0x2ef   : > { %v871_v18 = vpop.f32.mrf.mxu1 }
 0x2f0   : > { %1250 = vtanh.f32 %v877_v11  ;;  %v872_v41 = vadd.f32 %v1027_v47, %v871_v18 }
 0x2f1   : > { %v1163_v42 = vpop.f32.mrf.mxu1 }
 0x2f2   : > { %1252 = vtanh.f32 %v872_v41  ;;  %v887_v43 = vadd.f32 %v1163_v42, %v1027_v47 }
 0x2f3   : > { %v881_v44 = vpop.f32.mrf.mxu1 }
 0x2f4   : > { %1254 = vtanh.f32 %v887_v43  ;;  %v882_v46 = vadd.f32 %v1027_v47, %v881_v44  ;;  %v1151_v48 = vpop.f32.mrf.mxu0  ;;  %v1243_v49 = vpop.eup %1242 }
 0x2f5   : > { %v847_v10 = vadd.f32 %v1151_v48, %v1027_v47  ;;  %v1166_v54 = vpop.f32.mrf.mxu1  ;;  %928 = vst.msk [vmem:[%s1601_s18 + $0x8] sm:$0xff] %vm926_vm1, %v1243_v49 }
 0x2f6   : > { %1256 = vtanh.f32 %v882_v46  ;;  %v897_v55 = vadd.f32 %v1166_v54, %v1027_v47  ;;  %v841_v21 = vpop.f32.mrf.mxu0  ;;  %v1245_v51 = vpop.eup %1244 }
 0x2f7   : > { %1258 = vtanh.f32 %v847_v10  ;;  %v842_v57 = vadd.f32 %v1027_v47, %v841_v21  ;;  %v891_v59 = vpop.f32.mrf.mxu1  ;;  %927 = vst.msk [vmem:[%s1601_s18] sm:$0xff] %vm926_vm1, %v1245_v51 }
 0x2f8   : > { %1260 = vtanh.f32 %v897_v55  ;;  %v892_v60 = vadd.f32 %v1027_v47, %v891_v59 }
 0x2f9   : > { %v1247_v62 = vpop.eup %1246  ;;  %1262 = vtanh.f32 %v842_v57  ;;  %v1169_v50 = vpop.f32.mrf.mxu1 }
 0x2fa   : > { %934 = vst.msk [vmem:[%s1601_s18 + $0x38] sm:$0xff] %vm926_vm1, %v1247_v62  ;;  %1264 = vtanh.f32 %v892_v60  ;;  %v907_v52 = vadd.f32 %v1169_v50, %v1027_v47 }
 0x2fb   : > { %v1249_v0 = vpop.eup %1248  ;;  %v901_v35 = vpop.f32.mrf.mxu1 }
 0x2fc   : > { %v1154_v25 = vpop.f32.mrf.mxu0  ;;  %933 = vst.msk [vmem:[%s1601_s18 + $0x30] sm:$0xff] %vm926_vm1, %v1249_v0  ;;  %1266 = vtanh.f32 %v907_v52  ;;  %v902_v1 = vadd.f32 %v1027_v47, %v901_v35 }
 0x2fd   : > { %v857_v2 = vadd.f32 %v1154_v25, %v1027_v47  ;;  %v1251_v4 = vpop.eup %1250 }
 0x2fe   : > { %v851_v30 = vpop.f32.mrf.mxu0  ;;  %936 = vst.msk [vmem:[%s1601_s18 + $0x48] sm:$0xff] %vm926_vm1, %v1251_v4  ;;  %1268 = vtanh.f32 %v902_v1 }
 0x2ff   : > { %v852_v3 = vadd.f32 %v1027_v47, %v851_v30  ;;  %v1253_v5 = vpop.eup %1252  ;;  %1270 = vtanh.f32 %v857_v2 }
 0x300   : > { %935 = vst.msk [vmem:[%s1601_s18 + $0x40] sm:$0xff] %vm926_vm1, %v1253_v5 }
 0x301   : > { %1272 = vtanh.f32 %v852_v3  ;;  %v1255_v6 = vpop.eup %1254 }
 0x302   : > { %938 = vst.msk [vmem:[%s1601_s18 + $0x58] sm:$0xff] %vm926_vm1, %v1255_v6 }
 0x303   : > { %v1257_v8 = vpop.eup %1256 }
 0x304   : > { %v1259_v9 = vpop.eup %1258  ;;  %937 = vst.msk [vmem:[%s1601_s18 + $0x50] sm:$0xff] %vm926_vm1, %v1257_v8 }
 0x305   : > { %v1261_v12 = vpop.eup %1260  ;;  %930 = vst.msk [vmem:[%s1601_s18 + $0x18] sm:$0xff] %vm926_vm1, %v1259_v9 }
 0x306   : > { %v1263_v13 = vpop.eup %1262  ;;  %940 = vst.msk [vmem:[%s1601_s18 + $0x68] sm:$0xff] %vm926_vm1, %v1261_v12 }
 0x307   : > { %v1265_v45 = vpop.eup %1264  ;;  %929 = vst.msk [vmem:[%s1601_s18 + $0x10] sm:$0xff] %vm926_vm1, %v1263_v13 }
 0x308   : > { %939 = vst.msk [vmem:[%s1601_s18 + $0x60] sm:$0xff] %vm926_vm1, %v1265_v45 }
 0x309   : > { %v1267_v14 = vpop.eup %1266 }
 0x30a   : > { %942 = vst.msk [vmem:[%s1601_s18 + $0x78] sm:$0xff] %vm926_vm1, %v1267_v14 }
 0x30b   : > { %v1269_v15 = vpop.eup %1268 }
 0x30c   : > { %v1271_v16 = vpop.eup %1270  ;;  %941 = vst.msk [vmem:[%s1601_s18 + $0x70] sm:$0xff] %vm926_vm1, %v1269_v15 }
 0x30d   : > { %932 = vst.msk [vmem:[%s1601_s18 + $0x28] sm:$0xff] %vm926_vm1, %v1271_v16 }
 0x30e   : > { %v1273_v37 = vpop.eup %1272 }
 0x30f   : > { %931 = vst.msk [vmem:[%s1601_s18 + $0x20] sm:$0xff] %vm926_vm1, %v1273_v37 }
 0x310 PF: > { %s17_s24 = sadd.s32 1, %s1280_s24  }
 0x311   : > { %p14_p4 = scmp.ge.s32.totalorder %s17_s24, 4  }
 0x313   :  { %16 = sbr.rel (!%p14_p4) target bundleno = 1 (0x1), region = 78 }

</bundles_post_ra>
